<compile_context>
chip_gen: v7x
topology: tpu7x:2x2x1
jax: 0.10.0
libtpu: 0.0.40
codegen_flags: <defaults>
</compile_context>

<pallas_src>
import math
import random

import jax
import jax.numpy as jnp
from jax import lax
from jax.experimental import pallas as pl
from jax.experimental.pallas import tpu as pltpu


def _round_up(x, m):
    return ((x + m - 1) // m) * m


def _mix32(x):
    """lowbias32 integer mixer (Chris Wellons) - pure uint32 VPU ops."""
    x = x ^ (x >> 16)
    x = x * jnp.uint32(0x7FEB352D)
    x = x ^ (x >> 15)
    x = x * jnp.uint32(0x846CA68B)
    x = x ^ (x >> 16)
    return x


def _uniform_from_bits(bits):
    """uint32 bits -> uniform float32 in [0, 1) via the exponent-bit trick."""
    f = lax.bitcast_convert_type((bits >> 9) | jnp.uint32(0x3F800000), jnp.float32)
    return f - jnp.float32(1.0)


def _noise_add_kernel(seed_ref, std_ref, x_ref, o_ref):
    """out = x + std * N(0,1), noise generated in-kernel per tile.

    seed_ref, std_ref : scalar-prefetch SMEM refs (int32 seed, f32 noise std)
    x_ref, o_ref      : (TILE_M, LANES) f32 tiles in VMEM
    """
    x = x_ref[...]
    rows, lanes = x.shape
    half = lanes // 2

    # Unique per-element counters across the whole grid (per-tile offset from
    # program_id so parallel tiles never reproduce the same noise).
    row = lax.broadcasted_iota(jnp.int32, (rows, half), 0)
    col = lax.broadcasted_iota(jnp.int32, (rows, half), 1)
    lin = (row * half + col).astype(jnp.uint32)
    tile_base = pl.program_id(0).astype(jnp.uint32) * jnp.uint32(rows * half)
    key = seed_ref[0].astype(jnp.uint32) * jnp.uint32(0x9E3779B9)
    ctr = (tile_base + lin) * jnp.uint32(2) + key

    b1 = _mix32(ctr)
    b2 = _mix32(ctr + jnp.uint32(1))

    u1 = jnp.float32(1.0) - _uniform_from_bits(b1)   # (0, 1] -> log is safe
    u2 = _uniform_from_bits(b2)                      # [0, 1)

    # Two-output Box-Muller: one log + one sqrt yields two N(0,1) half-slabs.
    r = jnp.sqrt(jnp.float32(-2.0) * jnp.log(u1))
    theta = jnp.float32(2.0 * math.pi) * u2
    z = jnp.concatenate([r * jnp.cos(theta), r * jnp.sin(theta)], axis=-1)

    std = std_ref[0]
    o_ref[...] = (x + std * z).astype(o_ref.dtype)


def add_gaussian_noise_snr(signal, *, snr_db=2.0, p=1.0, seed=0, rng=None):
    """Pallas implementation of AddGaussianNoiseSNR.forward.

    signal: jnp array, e.g. [channels, time] waveform.
    """
    # Host-side probabilistic gate, mirroring TakeDice(p).
    coin = rng.random() if rng is not None else random.random()
    if not (coin < p):
        return signal

    orig_shape = signal.shape
    orig_dtype = signal.dtype
    x32 = jnp.asarray(signal, dtype=jnp.float32)

    # Full-array power reduction hoisted out of the kernel (XLA pairwise sum),
    # and the SNR scaling folded host-side:
    #   std = sqrt(signal_power / 10**(snr/10)) = sqrt(signal_power) * 10**(-snr/20)
    signal_power = jnp.mean(x32 * x32)
    std = jnp.sqrt(signal_power) * jnp.float32(10.0 ** (-snr_db / 20.0))
    std_arr = jnp.reshape(std, (1,))
    seed_arr = jnp.asarray([seed], dtype=jnp.int32)

    # Lane-dense slab: flatten and pad to (M_pad, LANES); LANES multiple of 128
    # so output stores are unmasked, and row tiles keep VMEM footprint small
    # (~2 MiB/tile f32, double-buffered in+out ~8 MiB, safe on v7x's 64 MiB).
    n = x32.size
    lanes = 1024
    m = pl.cdiv(n, lanes)
    tile_m = min(512, _round_up(m, 8))
    m_pad = _round_up(m, tile_m)
    flat = jnp.pad(jnp.ravel(x32), (0, m_pad * lanes - n))
    slab = flat.reshape(m_pad, lanes)

    out = pl.pallas_call(
        _noise_add_kernel,
        out_shape=jax.ShapeDtypeStruct((m_pad, lanes), jnp.float32),
        grid_spec=pltpu.PrefetchScalarGridSpec(
            num_scalar_prefetch=2,          # seed, std -> SMEM
            grid=(m_pad // tile_m,),
            in_specs=[
                pl.BlockSpec((tile_m, lanes), lambda i, seed_r, std_r: (i, 0)),
            ],
            out_specs=pl.BlockSpec((tile_m, lanes), lambda i, seed_r, std_r: (i, 0)),
        ),
        compiler_params=pltpu.CompilerParams(
            dimension_semantics=("parallel",),   # shard tiles across TCs (v7x)
            vmem_limit_bytes=32 * 1024 * 1024,
        ),
    )(seed_arr, std_arr, slab)

    noisy = out.reshape(-1)[:n].reshape(orig_shape)
    return noisy.astype(orig_dtype)


if __name__ == "__main__":
    # Deterministic example input: [channels=4, time=256] waveform.
    key = jax.random.PRNGKey(0)
    signal = jax.random.normal(key, (4, 256), dtype=jnp.float32)

    rng = random.Random(0)  # deterministic TakeDice
    noisy = add_gaussian_noise_snr(signal, snr_db=2.0, p=1.0, seed=0, rng=rng)
    noisy = jax.block_until_ready(noisy)

    # Sanity checks: shape/dtype preserved, noise actually added, and the
    # empirical noise power is roughly signal_power / 10**(snr/10).
    assert noisy.shape == signal.shape and noisy.dtype == signal.dtype
    noise = noisy - signal
    sig_power = float(jnp.mean(signal ** 2))
    noise_power = float(jnp.mean(noise ** 2))
    expected_noise_power = sig_power / (10.0 ** (2.0 / 10.0))
    assert noise_power > 0.0
    assert abs(noise_power - expected_noise_power) / expected_noise_power < 0.25

    print("KERNEL_OK")
</pallas_src>

<mosaic_0001>
module attributes {stable_mosaic.version = 11 : i64} {
  func.func @_noise_add_kernel(%arg0: i32, %arg1: memref<1xi32, #tpu.memory_space<smem>>, %arg2: memref<1xf32, #tpu.memory_space<smem>>, %arg3: memref<8x1024xf32, #tpu.memory_space<vmem>>, %arg4: memref<8x1024xf32, #tpu.memory_space<vmem>>) attributes {dimension_semantics = [#tpu.dimension_semantics<parallel>], iteration_bounds = array<i64: 1>, scalar_prefetch = 2 : i64, scratch_operands = 0 : i64, tpu.core_type = #tpu.core_type<tc>, window_params = [{transform_indices = @transform_0, window_bounds = array<i64: 8, 1024>}, {transform_indices = @transform_1, window_bounds = array<i64: 8, 1024>}]} {
    %c0 = arith.constant 0 : index
    %c0_0 = arith.constant 0 : index
    %0 = vector.load %arg3[%c0, %c0_0] : memref<8x1024xf32, #tpu.memory_space<vmem>>, vector<8x1024xf32>
    %1 = tpu.iota {dimensions = array<i32: 0>} : vector<8x512xi32>
    %2 = tpu.iota {dimensions = array<i32: 1>} : vector<8x512xi32>
    %c512_i32 = arith.constant 512 : i32
    %3 = vector.broadcast %c512_i32 : i32 to vector<8x512xi32>
    %4 = arith.muli %1, %3 : vector<8x512xi32>
    %5 = arith.addi %4, %2 : vector<8x512xi32>
    %c4096_i32 = arith.constant 4096 : i32
    %6 = arith.muli %arg0, %c4096_i32 : i32
    %c0_1 = arith.constant 0 : index
    %7 = memref.load %arg1[%c0_1] : memref<1xi32, #tpu.memory_space<smem>>
    %c-1640531527_i32 = arith.constant -1640531527 : i32
    %8 = arith.muli %7, %c-1640531527_i32 : i32
    %9 = vector.broadcast %6 : i32 to vector<8x512xi32>
    %10 = arith.addi %9, %5 : vector<8x512xi32>
    %c2_i32 = arith.constant 2 : i32
    %11 = vector.broadcast %c2_i32 : i32 to vector<8x512xi32>
    %12 = arith.muli %10, %11 : vector<8x512xi32>
    %13 = vector.broadcast %8 : i32 to vector<8x512xi32>
    %14 = arith.addi %12, %13 : vector<8x512xi32>
    %c16_i32 = arith.constant 16 : i32
    %15 = vector.broadcast %c16_i32 : i32 to vector<8x512xi32>
    %16 = arith.shrui %14, %15 : vector<8x512xi32>
    %17 = arith.xori %14, %16 : vector<8x512xi32>
    %c2146121005_i32 = arith.constant 2146121005 : i32
    %18 = vector.broadcast %c2146121005_i32 : i32 to vector<8x512xi32>
    %19 = arith.muli %17, %18 : vector<8x512xi32>
    %c15_i32 = arith.constant 15 : i32
    %20 = vector.broadcast %c15_i32 : i32 to vector<8x512xi32>
    %21 = arith.shrui %19, %20 : vector<8x512xi32>
    %22 = arith.xori %19, %21 : vector<8x512xi32>
    %c-2073254261_i32 = arith.constant -2073254261 : i32
    %23 = vector.broadcast %c-2073254261_i32 : i32 to vector<8x512xi32>
    %24 = arith.muli %22, %23 : vector<8x512xi32>
    %c16_i32_2 = arith.constant 16 : i32
    %25 = vector.broadcast %c16_i32_2 : i32 to vector<8x512xi32>
    %26 = arith.shrui %24, %25 : vector<8x512xi32>
    %27 = arith.xori %24, %26 : vector<8x512xi32>
    %c1_i32 = arith.constant 1 : i32
    %28 = vector.broadcast %c1_i32 : i32 to vector<8x512xi32>
    %29 = arith.addi %14, %28 : vector<8x512xi32>
    %c16_i32_3 = arith.constant 16 : i32
    %30 = vector.broadcast %c16_i32_3 : i32 to vector<8x512xi32>
    %31 = arith.shrui %29, %30 : vector<8x512xi32>
    %32 = arith.xori %29, %31 : vector<8x512xi32>
    %c2146121005_i32_4 = arith.constant 2146121005 : i32
    %33 = vector.broadcast %c2146121005_i32_4 : i32 to vector<8x512xi32>
    %34 = arith.muli %32, %33 : vector<8x512xi32>
    %c15_i32_5 = arith.constant 15 : i32
    %35 = vector.broadcast %c15_i32_5 : i32 to vector<8x512xi32>
    %36 = arith.shrui %34, %35 : vector<8x512xi32>
    %37 = arith.xori %34, %36 : vector<8x512xi32>
    %c-2073254261_i32_6 = arith.constant -2073254261 : i32
    %38 = vector.broadcast %c-2073254261_i32_6 : i32 to vector<8x512xi32>
    %39 = arith.muli %37, %38 : vector<8x512xi32>
    %c16_i32_7 = arith.constant 16 : i32
    %40 = vector.broadcast %c16_i32_7 : i32 to vector<8x512xi32>
    %41 = arith.shrui %39, %40 : vector<8x512xi32>
    %42 = arith.xori %39, %41 : vector<8x512xi32>
    %c9_i32 = arith.constant 9 : i32
    %43 = vector.broadcast %c9_i32 : i32 to vector<8x512xi32>
    %44 = arith.shrui %27, %43 : vector<8x512xi32>
    %c1065353216_i32 = arith.constant 1065353216 : i32
    %45 = vector.broadcast %c1065353216_i32 : i32 to vector<8x512xi32>
    %46 = arith.ori %44, %45 : vector<8x512xi32>
    %47 = tpu.bitcast %46 : vector<8x512xi32> -> vector<8x512xf32>
    %cst = arith.constant 1.000000e+00 : f32
    %48 = vector.broadcast %cst : f32 to vector<8x512xf32>
    %49 = arith.subf %47, %48 : vector<8x512xf32>
    %cst_8 = arith.constant 1.000000e+00 : f32
    %50 = vector.broadcast %cst_8 : f32 to vector<8x512xf32>
    %51 = arith.subf %50, %49 : vector<8x512xf32>
    %c9_i32_9 = arith.constant 9 : i32
    %52 = vector.broadcast %c9_i32_9 : i32 to vector<8x512xi32>
    %53 = arith.shrui %42, %52 : vector<8x512xi32>
    %c1065353216_i32_10 = arith.constant 1065353216 : i32
    %54 = vector.broadcast %c1065353216_i32_10 : i32 to vector<8x512xi32>
    %55 = arith.ori %53, %54 : vector<8x512xi32>
    %56 = tpu.bitcast %55 : vector<8x512xi32> -> vector<8x512xf32>
    %cst_11 = arith.constant 1.000000e+00 : f32
    %57 = vector.broadcast %cst_11 : f32 to vector<8x512xf32>
    %58 = arith.subf %56, %57 : vector<8x512xf32>
    %59 = math.log %51 : vector<8x512xf32>
    %cst_12 = arith.constant -2.000000e+00 : f32
    %60 = vector.broadcast %cst_12 : f32 to vector<8x512xf32>
    %61 = arith.mulf %60, %59 : vector<8x512xf32>
    %62 = math.sqrt %61 : vector<8x512xf32>
    %cst_13 = arith.constant 6.28318548 : f32
    %63 = vector.broadcast %cst_13 : f32 to vector<8x512xf32>
    %64 = arith.mulf %63, %58 : vector<8x512xf32>
    %65 = math.cos %64 : vector<8x512xf32>
    %66 = arith.mulf %62, %65 : vector<8x512xf32>
    %67 = math.sin %64 : vector<8x512xf32>
    %68 = arith.mulf %62, %67 : vector<8x512xf32>
    %69 = tpu.concatenate %66, %68 in 1 : vector<8x512xf32>, vector<8x512xf32> -> vector<8x1024xf32>
    %c0_14 = arith.constant 0 : index
    %70 = memref.load %arg2[%c0_14] : memref<1xf32, #tpu.memory_space<smem>>
    %71 = vector.broadcast %70 : f32 to vector<8x1024xf32>
    %72 = arith.mulf %71, %69 : vector<8x1024xf32>
    %73 = arith.addf %0, %72 : vector<8x1024xf32>
    %c0_15 = arith.constant 0 : index
    %c0_16 = arith.constant 0 : index
    %74 = vector.load %arg4[%c0_15, %c0_16] : memref<8x1024xf32, #tpu.memory_space<vmem>>, vector<8x1024xf32>
    tpu.vector_store %arg4[%c0_15, %c0_16], %73 {strides = array<i32>} : memref<8x1024xf32, #tpu.memory_space<vmem>>, vector<8x1024xf32>,
    return
  }
  func.func @transform_0(%arg0: i32, %arg1: memref<1xi32, #tpu.memory_space<smem>>, %arg2: memref<1xf32, #tpu.memory_space<smem>>) -> (i32, i32) {
    %c0_i32 = arith.constant 0 : i32
    %c0_i32_0 = arith.constant 0 : i32
    return %arg0, %c0_i32 : i32, i32
  }
  func.func @transform_1(%arg0: i32, %arg1: memref<1xi32, #tpu.memory_space<smem>>, %arg2: memref<1xf32, #tpu.memory_space<smem>>) -> (i32, i32) {
    %c0_i32 = arith.constant 0 : i32
    %c0_i32_0 = arith.constant 0 : i32
    return %arg0, %c0_i32 : i32, i32
  }
}

</mosaic_0001>

<bundles_post_ra>
// kernel: tpu_custom_call.1
= control target key start
LH: loop header
LB: loop body
LE: loop exit
PB: predicated region body
PF: predicated region fallthrough
CT: control target
= control target key end

     0   :  { %10 = vsyncpa [#allocation6], 0  ;;  %s1734_s0 = inlined_call_operand.<no memory space> [shape: s32[1], index: 0, kind: input, shape index: {}]   ;;  %s1735_s1 = inlined_call_operand.<no memory space> [shape: f32[1], index: 1, kind: input, shape index: {}]   ;;  %s1736_s2 = inlined_call_operand.hbm [shape: f32[8,1024], index: 2, kind: input, shape index: {}]   ;;  %s1737_s3 = inlined_call_operand.hbm [shape: f32[8,1024], index: 3, kind: output, shape index: {}]  }
   0x1   :  { %11 = vsyncpa [#allocation7], 0  ;;  %s1231_s12 = smov [#allocation5]   ;;  %s1183_s16 = scalar_lea.hbm %s1736_s2, 1024 }
   0x2   :  { %s18_s13 = sshll.u32 %s1231_s12, 4  ;;  %p1184_p0 = scmp.ne.s32.totalorder %s1736_s2, %s1183_s16  ;;  %s19_s13 = int_to_ptr.vmem [resolvable:$true] %s18_s13 }
   0x3   :  { %p1187_p1 = scmp.lt.u32.totalorder %s1183_s16, %s1736_s2 }
   0x5   :  { %p1189_p2 = pnand %p1187_p1, %p1184_p0 }
   0x7   :  { %1192 = shalt.err (!%p1189_p2)
}
   0x8   :  { %s1193_s21 = scalar_lea.vmem %s19_s13, 1024  ;;  %p1198_p4 = scmp.lt.s32.totalorder %s19_s13, %s19_s13 }
   0x9   :  { %p1194_p3 = scmp.ne.s32.totalorder %s19_s13, %s1193_s21  ;;  %p1199_p5 = scmp.lt.s32.totalorder %s1193_s21, %s1193_s21 }
   0xb   :  { %p1200_p6 = por %p1199_p5, %p1198_p4 }
   0xd   :  { %p1201_p7 = pnand %p1200_p6, %p1194_p3 }
   0xf   :  { %1204 = shalt.err (!%p1201_p7)
}
  0x10   :  { %21 = dma.hbm_to_vmem [thread:$0]  %s1736_s2, 1024, %s19_s13, [#allocation6]  }
  0x11   :  { %1227 = dma.done.wait [#allocation6], 1024  }
  0x12   :  { %1228 = vsyncadd [#allocation6], 4294966272  ;;  %v33_v0 = vlaneseq  ;;  %s47_s26 = smul.u32 2654435769, %s1734_s0 }
  0x14   :  { %v34_v1 = vshrl.u32 %v33_v0, 7  ;;  %v36_v2 = vand.u32 127, %v33_v0  ;;  %v57_v11 = vstv %s47_s26 }
  0x16   :  { %v40_v3 = vmul.u32 512, %v34_v1  ;;  %v37_v4 = vadd.s32 128, %v36_v2  ;;  %v38_v5 = vadd.s32 256, %v36_v2  ;;  %v39_v6 = vadd.s32 384, %v36_v2 }
  0x18   :  { %v41_v7 = vadd.s32 %v40_v3, %v36_v2  ;;  %v42_v8 = vadd.s32 %v40_v3, %v37_v4  ;;  %v43_v9 = vadd.s32 %v40_v3, %v38_v5  ;;  %v44_v10 = vadd.s32 %v40_v3, %v39_v6 }
  0x1a   :  { %v53_v12 = vmul.u32 2, %v41_v7  ;;  %v54_v13 = vmul.u32 2, %v42_v8 }
  0x1b   :  { %v55_v14 = vmul.u32 2, %v43_v9  ;;  %v56_v15 = vmul.u32 2, %v44_v10 }
  0x1c   :  { %v58_v16 = vadd.s32 %v57_v11, %v53_v12  ;;  %v59_v17 = vadd.s32 %v57_v11, %v54_v13 }
  0x1d   :  { %v60_v18 = vadd.s32 %v57_v11, %v55_v14  ;;  %v61_v19 = vadd.s32 %v57_v11, %v56_v15 }
  0x1e   :  { %v62_v20 = vshrl.u32 %v58_v16, 16  ;;  %v94_v21 = vadd.s32 1, %v58_v16  ;;  %v63_v22 = vshrl.u32 %v59_v17, 16  ;;  %v95_v23 = vadd.s32 1, %v59_v17 }
  0x1f   :  { %v96_v24 = vadd.s32 1, %v60_v18  ;;  %v97_v25 = vadd.s32 1, %v61_v19  ;;  %v64_v30 = vshrl.u32 %v60_v18, 16  ;;  %v65_v32 = vshrl.u32 %v61_v19, 16 }
  0x20   :  { %v66_v26 = vxor.u32 %v62_v20, %v58_v16  ;;  %v98_v27 = vshrl.u32 %v94_v21, 16  ;;  %v67_v28 = vxor.u32 %v63_v22, %v59_v17  ;;  %v99_v29 = vshrl.u32 %v95_v23, 16 }
  0x21   :  { %v100_v31 = vshrl.u32 %v96_v24, 16  ;;  %v101_v38 = vshrl.u32 %v97_v25, 16  ;;  %v68_v43 = vxor.u32 %v64_v30, %v60_v18  ;;  %v69_v45 = vxor.u32 %v65_v32, %v61_v19 }
  0x22   :  { %v70_v33 = vmul.u32 2146121005, %v66_v26  ;;  %v102_v34 = vxor.u32 %v98_v27, %v94_v21  ;;  %v71_v35 = vmul.u32 2146121005, %v67_v28  ;;  %v103_v36 = vxor.u32 %v99_v29, %v95_v23 }
  0x23   :  { %v104_v37 = vxor.u32 %v100_v31, %v96_v24  ;;  %v105_v51 = vxor.u32 %v101_v38, %v97_v25  ;;  %v72_v56 = vmul.u32 2146121005, %v68_v43  ;;  %v73_v58 = vmul.u32 2146121005, %v69_v45 }
  0x24   :  { %v74_v39 = vshrl.u32 %v70_v33, 15  ;;  %v106_v40 = vmul.u32 2146121005, %v102_v34  ;;  %v75_v41 = vshrl.u32 %v71_v35, 15  ;;  %v107_v42 = vmul.u32 2146121005, %v103_v36 }
  0x25   :  { %v108_v44 = vmul.u32 2146121005, %v104_v37  ;;  %v109_v0 = vmul.u32 2146121005, %v105_v51  ;;  %v76_v4 = vshrl.u32 %v72_v56, 15  ;;  %v77_v9 = vshrl.u32 %v73_v58, 15 }
  0x26   :  { %v78_v46 = vxor.u32 %v74_v39, %v70_v33  ;;  %v110_v47 = vshrl.u32 %v106_v40, 15  ;;  %v79_v48 = vxor.u32 %v75_v41, %v71_v35  ;;  %v111_v49 = vshrl.u32 %v107_v42, 15 }
  0x27   :  { %v112_v50 = vshrl.u32 %v108_v44, 15  ;;  %v113_v12 = vshrl.u32 %v109_v0, 15  ;;  %v80_v16 = vxor.u32 %v76_v4, %v72_v56  ;;  %v81_v20 = vxor.u32 %v77_v9, %v73_v58 }
  0x28   :  { %v82_v52 = vmul.u32 2221713035, %v78_v46  ;;  %v114_v53 = vxor.u32 %v110_v47, %v106_v40  ;;  %v83_v54 = vmul.u32 2221713035, %v79_v48  ;;  %v115_v55 = vxor.u32 %v111_v49, %v107_v42 }
  0x29   :  { %v116_v57 = vxor.u32 %v112_v50, %v108_v44  ;;  %v117_v23 = vxor.u32 %v113_v12, %v109_v0  ;;  %v84_v27 = vmul.u32 2221713035, %v80_v16  ;;  %v85_v30 = vmul.u32 2221713035, %v81_v20 }
  0x2a   :  { %v86_v59 = vshrl.u32 %v82_v52, 16  ;;  %v118_v60 = vmul.u32 2221713035, %v114_v53  ;;  %v119_v61 = vmul.u32 2221713035, %v115_v55  ;;  %v87_v62 = vshrl.u32 %v83_v54, 16 }
  0x2b   :  { %v120_v63 = vmul.u32 2221713035, %v116_v57  ;;  %v121_v33 = vmul.u32 2221713035, %v117_v23  ;;  %v88_v38 = vshrl.u32 %v84_v27, 16  ;;  %v89_v39 = vshrl.u32 %v85_v30, 16 }
  0x2c   :  { %v90_v1 = vxor.u32 %v86_v59, %v82_v52  ;;  %v122_v2 = vshrl.u32 %v118_v60, 16  ;;  %v123_v3 = vshrl.u32 %v119_v61, 16  ;;  %v91_v10 = vxor.u32 %v87_v62, %v83_v54 }
  0x2d   :  { %v124_v5 = vshrl.u32 %v120_v63, 16  ;;  %v125_v43 = vshrl.u32 %v121_v33, 16  ;;  %v1284_v49 = vxor.u32 %v88_v38, %v84_v27  ;;  %v1286_v50 = vxor.u32 %v89_v39, %v85_v30 }
  0x2e   :  { %v126_v6 = vxor.u32 %v122_v2, %v118_v60  ;;  %v130_v7 = vshrl.u32 %v90_v1, 9  ;;  %v127_v8 = vxor.u32 %v123_v3, %v119_v61  ;;  %v131_v21 = vshrl.u32 %v91_v10, 9 }
  0x2f   :  { %v128_v11 = vxor.u32 %v124_v5, %v120_v63  ;;  %v1290_v54 = vxor.u32 %v125_v43, %v121_v33  ;;  %v132_v61 = vshrl.u32 %v1284_v49, 9  ;;  %v133_v62 = vshrl.u32 %v1286_v50, 9 }
  0x30   :  { %v134_v13 = vor.u32 1065353216, %v130_v7  ;;  %v150_v14 = vshrl.u32 %v126_v6, 9  ;;  %v151_v15 = vshrl.u32 %v127_v8, 9  ;;  %v135_v31 = vor.u32 1065353216, %v131_v21 }
  0x31   :  { %v152_v22 = vshrl.u32 %v128_v11, 9  ;;  %v153_v1 = vshrl.u32 %v1290_v54, 9  ;;  %v1232_v3 = vmov 683565275   ;;  %v1233_v5 = vmov 2475754826  }
  0x32   :  { %v1087_v17 = vadd.f32 -1.0, %v134_v13  ;;  %v154_v18 = vor.u32 1065353216, %v150_v14  ;;  %v155_v19 = vor.u32 1065353216, %v151_v15  ;;  %v1088_v40 = vadd.f32 -1.0, %v135_v31 }
  0x33   :  { %v156_v32 = vor.u32 1065353216, %v152_v22  ;;  %v1234_v7 = vmov 2131351028   ;;  %v1235_v16 = vmov 2102212464  }
  0x34   :  { %v146_v24 = vsub.f32 1.0, %v1087_v17  ;;  %v1091_v25 = vadd.f32 -1.0, %v154_v18  ;;  %v1092_v26 = vadd.f32 -1.0, %v155_v19  ;;  %v147_v51 = vsub.f32 1.0, %v1088_v40 }
  0x35   :  { %v1093_v42 = vadd.f32 -1.0, %v156_v32  ;;  %v1236_v19 = vmov 920167782   ;;  %v1237_v22 = vmov 1326507024  }
  0x36   :  { %v1274_v28 = vmul.f32 6.2831855, %v1091_v25  ;;  %v1276_v29 = vmul.f32 6.2831855, %v1092_v26  ;;  %1151 = vlog2.f32 %v146_v24 }
  0x37   :  { %v1288_v53 = vmul.f32 6.2831855, %v1093_v42  ;;  %1153 = vlog2.f32 %v147_v51 }
  0x38   :  { %v213_v34 = vand.u32 2139095040, %v1274_v28  ;;  %v210_v35 = vand.u32 2147483647, %v1274_v28  ;;  %v316_v36 = vand.u32 2139095040, %v1276_v29  ;;  %v313_v46 = vand.u32 2147483647, %v1276_v29 }
  0x39   :  { %v419_v0 = vand.u32 2139095040, %v1288_v53  ;;  %vm212_vm15 = vcmp.lt.s32.totalorder %v1274_v28, 0 }
  0x3a   :  { %v214_v37 = vshrl.u32 %v213_v34, 23  ;;  %v317_v41 = vshrl.u32 %v316_v36, 23  ;;  %v217_v45 = vand.u32 8388607, %v210_v35  ;;  %v1294_v57 = vand.u32 8388607, %v313_v46 }
  0x3c   :  { %v1095_v44 = vadd.s32 4294967169, %v214_v37  ;;  %v1099_v47 = vadd.s32 4294967169, %v317_v41  ;;  %v218_v55 = vor.u32 8388608, %v217_v45  ;;  %v321_v11 = vor.u32 8388608, %v1294_v57 }
  0x3d   :  { %v420_v41 = vshrl.u32 %v419_v0, 23  ;;  %v157_v57 = vor.u32 1065353216, %v153_v1 }
  0x3e   :  { %v220_v48 = vadd.s32 1, %v1095_v44  ;;  %v323_v52 = vadd.s32 1, %v1099_v47  ;;  %v1303_v10 = vshll.u32 %v218_v55, 8  ;;  %v1344_v1 = vshll.u32 %v321_v11, 8 }
  0x40   :  { %vm221_vm0 = vcmp.gt.s32.totalorder %v220_v48, 0  ;;  %vm324_vm1 = vcmp.gt.s32.totalorder %v323_v52, 0  ;;  %v1152_v58 = vpop.eup %1151 }
  0x41   :  { %v222_v56 = vsel %vm221_vm0, %v220_v48, 0  ;;  %v325_v60 = vsel %vm324_vm1, %v323_v52, 0  ;;  %v167_v9 = vmul.f32 0.6931472, %v1152_v58  ;;  %v1154_v42 = vpop.eup %1153  ;;  %vm1438_vm1 = vcmp.le.f32.partialorder %v210_v35, 0.7853982 }
  0x42   :  { %v224_v59 = vand.u32 31, %v222_v56  ;;  %v223_v63 = vshrl.u32 %v222_v56, 5  ;;  %v1306_v12 = vand.u32 31, %v325_v60  ;;  %v136_v56 = vor.u32 1065353216, %v132_v61 }
  0x43   :  { %v1329_v54 = vmul.f32 -2.0, %v167_v9 }
  0x44   :  { %v225_v2 = vsub.s32 32, %v224_v59  ;;  %v227_v4 = vshll.u32 %v1232_v3, %v224_v59  ;;  %v230_v6 = vshll.u32 %v1233_v5, %v224_v59  ;;  %v233_v8 = vshll.u32 %v1234_v7, %v224_v59 }
  0x45   :  { %v236_v18 = vshll.u32 %v1235_v16, %v224_v59  ;;  %v239_v21 = vshll.u32 %v1236_v19, %v224_v59  ;;  %vm242_vm2 = vcmp.lt.s32.totalorder %v223_v63, 1  ;;  %vm243_vm3 = vcmp.lt.s32.totalorder %v223_v63, 2 }
  0x46   :  { %v226_v13 = vshrl.u32 %v1232_v3, %v225_v2  ;;  %v228_v14 = vshrl.u32 %v1233_v5, %v225_v2  ;;  %v231_v15 = vshrl.u32 %v1234_v7, %v225_v2  ;;  %v234_v17 = vshrl.u32 %v1235_v16, %v225_v2 }
  0x47   :  { %v237_v20 = vshrl.u32 %v1236_v19, %v225_v2  ;;  %v240_v23 = vshrl.u32 %v1237_v22, %v225_v2  ;;  %vm244_vm4 = vcmp.lt.s32.totalorder %v223_v63, 3  ;;  %vm245_vm5 = vcmp.lt.s32.totalorder %v223_v63, 4 }
  0x48   :  { %v229_v24 = vor.u32 %v228_v14, %v227_v4  ;;  %v232_v25 = vor.u32 %v231_v15, %v230_v6  ;;  %v235_v26 = vor.u32 %v234_v17, %v233_v8  ;;  %v328_v47 = vsub.s32 32, %v1306_v12 }
  0x49   :  { %v238_v27 = vor.u32 %v237_v20, %v236_v18  ;;  %v241_v30 = vor.u32 %v240_v23, %v239_v21  ;;  %v330_v55 = vshll.u32 %v1232_v3, %v1306_v12  ;;  %v169_v59 = vmul.f32 0.6931472, %v1154_v42 }
  0x4a   :  { %v246_v31 = vsel %vm242_vm2, %v226_v13, %v229_v24  ;;  %v250_v32 = vsel %vm242_vm2, %v229_v24, %v232_v25  ;;  %v254_v33 = vsel %vm242_vm2, %v232_v25, %v235_v26  ;;  %v247_v34 = vsel %vm245_vm5, %v235_v26, 2102212464 }
  0x4b   :  { %v251_v36 = vsel %vm245_vm5, %v238_v27, 920167782  ;;  %v255_v37 = vsel %vm245_vm5, %v241_v30, 1326507024  ;;  %v248_v38 = vsel %vm244_vm4, %v232_v25, %v247_v34  ;;  %v326_v63 = vshrl.u32 %v325_v60, 5 }
  0x4c   :  { %v252_v39 = vsel %vm244_vm4, %v235_v26, %v251_v36  ;;  %v256_v40 = vsel %vm244_vm4, %v238_v27, %v255_v37  ;;  %v249_v43 = vsel %vm243_vm3, %v246_v31, %v248_v38  ;;  %v331_v0 = vshrl.u32 %v1233_v5, %v328_v47 }
  0x4d   :  { %v253_v44 = vsel %vm243_vm3, %v250_v32, %v252_v39  ;;  %v257_v45 = vsel %vm243_vm3, %v254_v33, %v256_v40  ;;  %v265_v58 = vmul.u32 %v1303_v10, %v249_v43  ;;  %v333_v2 = vshll.u32 %v1233_v5, %v1306_v12 }
  0x4e   :  { %v1321_v48 = vmul.u32.u64.low %v1303_v10, %v257_v45  ;;  %v1322_v49 = vmul.u32.u64.high %v1303_v10, %v257_v45, %v1321_v48  ;;  %v1325_v51 = vmul.u32.u64.low %v1303_v10, %v253_v44  ;;  %v1326_v52 = vmul.u32.u64.high %v1303_v10, %v253_v44, %v1325_v51 }
  0x4f   :  { %v334_v4 = vshrl.u32 %v1234_v7, %v328_v47  ;;  %v336_v6 = vshll.u32 %v1234_v7, %v1306_v12  ;;  %v337_v8 = vshrl.u32 %v1235_v16, %v328_v47  ;;  %v1103_v60 = vadd.s32 4294967169, %v420_v41 }
  0x50   :  { %vm267_vm6 = vc.u32 %v1322_v49, %v1325_v51  ;;  %v268_v61 = vadd.s32 1, %v1326_v52  ;;  %1155 = vrsqrt.f32 %v1329_v54  ;;  %v332_v9 = vor.u32 %v331_v0, %v330_v55 }
  0x51   :  { %v335_v10 = vor.u32 %v334_v4, %v333_v2  ;;  %v338_v13 = vor.u32 %v337_v8, %v336_v6  ;;  %v339_v15 = vshll.u32 %v1235_v16, %v1306_v12  ;;  %v340_v17 = vshrl.u32 %v1236_v19, %v328_v47 }
  0x52   :  { %v269_v14 = vsel %vm267_vm6, %v268_v61, %v1326_v52  ;;  %v342_v18 = vshll.u32 %v1236_v19, %v1306_v12  ;;  %v1353_v21 = vmul.f32 -2.0, %v169_v59  ;;  %v343_v11 = vshrl.u32 %v1237_v22, %v328_v47 }
  0x53   :  { %v270_v20 = vadd.s32 %v269_v14, %v265_v58  ;;  %vm345_vm7 = vcmp.lt.s32.totalorder %v326_v63, 1  ;;  %v329_v23 = vshrl.u32 %v1232_v3, %v328_v47  ;;  %v341_v24 = vor.u32 %v340_v17, %v339_v15 }
  0x54   :  { %vm347_vm8 = vcmp.lt.s32.totalorder %v326_v63, 3  ;;  %vm348_vm9 = vcmp.lt.s32.totalorder %v326_v63, 4  ;;  %v344_v26 = vor.u32 %v343_v11, %v342_v18  ;;  %vm346_vm10 = vcmp.lt.s32.totalorder %v326_v63, 2 }
  0x55   :  { %v271_v25 = vadd.s32 536870912, %v270_v20  ;;  %v426_v27 = vadd.s32 1, %v1103_v60  ;;  %v350_v30 = vsel %vm348_vm9, %v338_v13, 2102212464  ;;  %v353_v31 = vsel %vm345_vm7, %v332_v9, %v335_v10 }
  0x56   :  { %v354_v32 = vsel %vm348_vm9, %v341_v24, 920167782  ;;  %v357_v12 = vsel %vm345_vm7, %v335_v10, %v338_v13  ;;  %1157 = vrsqrt.f32 %v1353_v21  ;;  %v358_v36 = vsel %vm348_vm9, %v344_v26, 1326507024 }
  0x57   :  { %v1359_v33 = vshrl.u32 %v271_v25, 30  ;;  %v355_v34 = vsel %vm347_vm8, %v338_v13, %v354_v32  ;;  %v349_v37 = vsel %vm345_vm7, %v329_v23, %v332_v9  ;;  %v359_v38 = vsel %vm347_vm8, %v341_v24, %v358_v36 }
  0x58   :  { %v1089_v39 = vadd.f32 -1.0, %v136_v56  ;;  %v1094_v40 = vadd.f32 -1.0, %v157_v57  ;;  %v351_v42 = vsel %vm347_vm8, %v335_v10, %v350_v30  ;;  %v356_v43 = vsel %vm346_vm10, %v353_v31, %v355_v34 }
  0x59   :  { %v273_v41 = vshll.u32 %v1359_v33, 30  ;;  %v360_v44 = vsel %vm346_vm10, %v357_v12, %v359_v38  ;;  %v416_v48 = vand.u32 2147483647, %v1288_v53  ;;  %vm427_vm11 = vcmp.gt.s32.totalorder %v426_v27, 0 }
  0x5a   :  { %v1370_v45 = vmul.u32.u64.low %v1344_v1, %v360_v44  ;;  %v1371_v47 = vmul.u32.u64.high %v1344_v1, %v360_v44, %v1370_v45  ;;  %v1156_v52 = vpop.eup %1155  ;;  %v352_v56 = vsel %vm346_vm10, %v349_v37, %v351_v42  ;;  %v137_v59 = vor.u32 1065353216, %v133_v62 }
  0x5b   :  { %v1374_v55 = vsub.s32 %v270_v20, %v273_v41  ;;  %v1378_v57 = vmul.u32.u64.low %v1344_v1, %v356_v43  ;;  %v1379_v58 = vmul.u32.u64.high %v1344_v1, %v356_v43, %v1378_v57  ;;  %v148_v2 = vsub.f32 1.0, %v1089_v39 }
  0x5c   :  { %v1385_v4 = vmul.f32 6.2831855, %v1094_v40  ;;  %v1390_v6 = vstv %s1735_s1  ;;  %v423_v63 = vand.u32 8388607, %v416_v48  ;;  %v428_v8 = vsel %vm427_vm11, %v426_v27, 0  ;;  %s1238_s1 = smov [#allocation8]  }
  0x5d   :  { %v276_v0 = vsub.s32 0, %v1374_v55  ;;  %v179_v61 = vmul.f32 %v1156_v52, %v1329_v54  ;;  %v368_v50 = vmul.u32 %v1344_v1, %v352_v56  ;;  %vm370_vm12 = vc.u32 %v1371_v47, %v1378_v57  ;;  %s1078_s27 = sshll.u32 %s1238_s1, 4  ;;  %s1079_s27 = int_to_ptr.vmem [resolvable:$true] %s1078_s27 }
  0x5e   :  { %vm180_vm13 = vcmp.eq.f32.partialorder %v1329_v54, inf  ;;  %v371_v62 = vadd.s32 1, %v1379_v58  ;;  %v430_v9 = vand.u32 31, %v428_v8  ;;  %v1401_v10 = vadd.f32 -1.0, %v137_v59  ;;  %s1205_s28 = scalar_lea.vmem %s1079_s27, 1024  ;;  %p1210_p9 = scmp.lt.s32.totalorder %s1079_s27, %s1079_s27 }
  0x5f   :  { %v1096_v60 = vmin.u32 %v276_v0, %v1374_v55  ;;  %1159 = vlog2.f32 %v148_v2  ;;  %v519_v15 = vand.u32 2147483647, %v1385_v4  ;;  %v522_v17 = vand.u32 2139095040, %v1385_v4  ;;  %p1206_p8 = scmp.ne.s32.totalorder %s1079_s27, %s1205_s28  ;;  %p1211_p10 = scmp.lt.s32.totalorder %s1205_s28, %s1205_s28 }
  0x60   :  { %v1158_v13 = vpop.eup %1157  ;;  %v183_v18 = vand.u32 2147483648, %v1329_v54  ;;  %v372_v1 = vsel %vm370_vm12, %v371_v62, %v1379_v58  ;;  %v424_v20 = vor.u32 8388608, %v423_v63  ;;  %v431_v11 = vsub.s32 32, %v430_v9 }
  0x61   :  { %v278_v14 = vclz %v1096_v60  ;;  %v1408_v23 = vsel %vm180_vm13, %v1329_v54, %v179_v61  ;;  %v190_v25 = vand.u32 2147483648, %v1353_v21  ;;  %v373_v26 = vadd.s32 %v372_v1, %v368_v50  ;;  %p1212_p11 = por %p1211_p10, %p1210_p9 }
  0x62   :  { %v266_v27 = vadd.s32 %v1325_v51, %v1322_v49  ;;  %v1414_v30 = vmul.f32 %v1158_v13, %v1353_v21  ;;  %v1416_v31 = vshrl.u32 %v428_v8, 5  ;;  %v433_v32 = vshll.u32 %v1232_v3, %v430_v9 }
  0x63   :  { %v1097_v24 = vadd.s32 4294967294, %v278_v14  ;;  %v374_v12 = vadd.s32 536870912, %v373_v26  ;;  %v436_v34 = vshll.u32 %v1233_v5, %v430_v9  ;;  %v442_v36 = vshll.u32 %v1235_v16, %v430_v9  ;;  %p1213_p12 = pnand %p1212_p11, %p1206_p8 }
  0x64   :  { %v434_v38 = vshrl.u32 %v1233_v5, %v431_v11  ;;  %v437_v49 = vshrl.u32 %v1234_v7, %v431_v11  ;;  %v443_v51 = vshrl.u32 %v1236_v19, %v431_v11  ;;  %v439_v43 = vshll.u32 %v1234_v7, %v430_v9 }
  0x65   :  { %vm1098_vm14 = vcmp.lt.s32.totalorder %v1097_v24, 0  ;;  %v1426_v42 = vshrl.u32 %v374_v12, 30  ;;  %v440_v44 = vshrl.u32 %v1235_v16, %v431_v11  ;;  %v445_v45 = vshll.u32 %v1236_v19, %v430_v9 }
  0x66   :  { %v281_v37 = vsel %vm1098_vm14, 0, %v1097_v24  ;;  %v446_v52 = vshrl.u32 %v1237_v22, %v431_v11  ;;  %v296_v59 = vsub.s32 4, %v1359_v33  ;;  %vm187_vm0 = vcmp.eq.f32.partialorder %v1353_v21, inf }
  0x67   :  { %v282_v39 = vsub.s32 32, %v281_v37  ;;  %v283_v40 = vshll.u32 %v1374_v55, %v281_v37  ;;  %v286_v41 = vsub.s32 4294967266, %v281_v37  ;;  %v376_v0 = vshll.u32 %v1426_v42, 30 }
  0x68   :  { %v432_v55 = vshrl.u32 %v1232_v3, %v431_v11  ;;  %v435_v2 = vor.u32 %v434_v38, %v433_v32  ;;  %v438_v63 = vor.u32 %v437_v49, %v436_v34  ;;  %v444_v8 = vor.u32 %v443_v51, %v442_v36 }
  0x69   :  { %v284_v56 = vshrl.u32 %v266_v27, %v282_v39  ;;  %v287_v58 = vadd.s32 127, %v286_v41  ;;  %v1160_v61 = vpop.eup %1159  ;;  %v1442_v9 = vsub.s32 %v373_v26, %v376_v0  ;;  %vm448_vm2 = vcmp.lt.s32.totalorder %v1416_v31, 1 }
  0x6a   :  { %v441_v13 = vor.u32 %v440_v44, %v439_v43  ;;  %v447_v14 = vor.u32 %v446_v52, %v445_v45  ;;  %vm451_vm3 = vcmp.lt.s32.totalorder %v1416_v31, 4  ;;  %v464_v1 = vshll.u32 %v424_v20, 8 }
  0x6b   :  { %v285_v50 = vor.u32 %v284_v56, %v283_v40  ;;  %v288_v62 = vshll.u32 %v287_v58, 23  ;;  %v379_v27 = vsub.s32 0, %v1442_v9  ;;  %vm450_vm4 = vcmp.lt.s32.totalorder %v1416_v31, 3 }
  0x6c   :  { %vm449_vm5 = vcmp.lt.s32.totalorder %v1416_v31, 2  ;;  %v453_v35 = vsel %vm451_vm3, %v441_v13, 2102212464  ;;  %v456_v26 = vsel %vm448_vm2, %v435_v2, %v438_v63  ;;  %v457_v32 = vsel %vm451_vm3, %v444_v8, 920167782 }
  0x6d   :  { %v289_v11 = vor.u32 4788187, %v288_v62  ;;  %v292_v24 = vcvt.s32.f32 %v285_v50  ;;  %vm182_vm6 = vcmp.eq.f32.partialorder %v1329_v54, 0.0  ;;  %v297_v12 = vsel %vm212_vm15, %v296_v59, %v1359_v33 }
  0x6e   :  { %v1100_v34 = vmin.u32 %v379_v27, %v1442_v9  ;;  %v452_v36 = vsel %vm448_vm2, %v432_v55, %v435_v2  ;;  %v454_v37 = vsel %vm450_vm4, %v438_v63, %v453_v35  ;;  %v458_v38 = vsel %vm450_vm4, %v441_v13, %v457_v32 }
  0x6f   :  { %v290_v20 = vand.u32 2147483647, %v289_v11  ;;  %v460_v49 = vsel %vm448_vm2, %v438_v63, %v441_v13  ;;  %v461_v51 = vsel %vm451_vm3, %v447_v14, 1326507024  ;;  %vm189_vm7 = vcmp.eq.f32.partialorder %v1353_v21, 0.0 }
  0x70   :  { %v381_v33 = vclz %v1100_v34  ;;  %v459_v40 = vsel %vm449_vm5, %v456_v26, %v458_v38  ;;  %v523_v41 = vshrl.u32 %v522_v17, 23  ;;  %v171_v43 = vmul.f32 0.6931472, %v1160_v61 }
  0x71   :  { %v293_v39 = vmul.f32 %v292_v24, %v290_v20  ;;  %v462_v44 = vsel %vm450_vm4, %v444_v8, %v461_v51  ;;  %v1477_v45 = vmul.u32.u64.low %v464_v1, %v459_v40  ;;  %v1478_v52 = vmul.u32.u64.high %v464_v1, %v459_v40, %v1477_v45 }
  0x72   :  { %vm315_vm8 = vcmp.lt.s32.totalorder %v1276_v29, 0  ;;  %v1101_v58 = vadd.s32 4294967294, %v381_v33  ;;  %v455_v59 = vsel %vm449_vm5, %v452_v36, %v454_v37  ;;  %v463_v0 = vsel %vm449_vm5, %v460_v49, %v462_v44 }
  0x73   :  { %v294_v56 = vxor.u32 2147483648, %v293_v39  ;;  %v299_v17 = vsel %vm1438_vm1, 0, %v297_v12  ;;  %v188_v55 = vsel %vm187_vm0, %v1353_v21, %v1414_v30  ;;  %v369_v61 = vadd.s32 %v1378_v57, %v1371_v47 }
  0x74   :  { %v1491_v2 = vmul.u32.u64.low %v464_v1, %v463_v0  ;;  %v1492_v63 = vmul.u32.u64.high %v464_v1, %v463_v0, %v1491_v2  ;;  %vm1102_vm9 = vcmp.lt.s32.totalorder %v1101_v58, 0  ;;  %v1107_v31 = vadd.s32 4294967169, %v523_v41 }
  0x75   :  { %v295_v8 = vsel %vm212_vm15, %v294_v56, %v293_v39  ;;  %v384_v62 = vsel %vm1102_vm9, 0, %v1101_v58  ;;  %v471_v13 = vmul.u32 %v464_v1, %v455_v59  ;;  %v474_v14 = vadd.s32 1, %v1478_v52 }
  0x76   :  { %v298_v50 = vsel %vm1438_vm1, %v1274_v28, %v295_v8  ;;  %v385_v30 = vsub.s32 32, %v384_v62  ;;  %v386_v11 = vshll.u32 %v1442_v9, %v384_v62  ;;  %v389_v24 = vsub.s32 4294967266, %v384_v62 }
  0x77   :  { %1161 = vcosq.f32 %v298_v50  ;;  %v303_v27 = vand.u32 3, %v299_v17  ;;  %v399_v35 = vsub.s32 4, %v1426_v42  ;;  %vm473_vm10 = vc.u32 %v1492_v63, %v1477_v45 }
  0x78   :  { %1163 = vsinq.f32 %v298_v50  ;;  %v387_v47 = vshrl.u32 %v369_v61, %v385_v30  ;;  %v390_v57 = vadd.s32 127, %v389_v24  ;;  %v475_v60 = vsel %vm473_vm10, %v474_v14, %v1478_v52 }
  0x79   :  { %v529_v26 = vadd.s32 1, %v1107_v31  ;;  %v1511_v1 = vsel %vm182_vm6, %v183_v18, %v1408_v23  ;;  %vm1515_vm11 = vcmp.le.f32.partialorder %v313_v46, 0.7853982  ;;  %v476_v32 = vadd.s32 %v475_v60, %v471_v13 }
  0x7a   :  { %v526_v20 = vand.u32 8388607, %v519_v15  ;;  %v388_v12 = vor.u32 %v387_v47, %v386_v11  ;;  %v391_v34 = vshll.u32 %v390_v57, 23  ;;  %v1521_v36 = vmul.f32 -2.0, %v171_v43 }
  0x7b   :  { %vm530_vm12 = vcmp.gt.s32.totalorder %v529_v26, 0  ;;  %vm302_vm13 = vweird.f32 %v1274_v28  ;;  %v1528_v54 = vsel %vm189_vm7, %v190_v25, %v188_v55  ;;  %v400_v46 = vsel %vm315_vm8, %v399_v35, %v1426_v42 }
  0x7c   :  { %v477_v18 = vadd.s32 536870912, %v476_v32  ;;  %v531_v23 = vsel %vm530_vm12, %v529_v26, 0  ;;  %vm304_vm14 = vcmp.lt.s32.totalorder %v303_v27, 2  ;;  %v392_v37 = vor.u32 4788187, %v391_v34 }
  0x7d   :  { %v395_v38 = vcvt.s32.f32 %v388_v12  ;;  %v533_v49 = vand.u32 31, %v531_v23  ;;  %vm305_vm15 = vcmp.eq.s32.totalorder %v303_v27, 0  ;;  %v527_v39 = vor.u32 8388608, %v526_v20  ;;  %v25_v12 = vld [vmem:[#allocation5] sm:$0xff] }
  0x7e   :  { %v1533_v51 = vshrl.u32 %v477_v18, 30  ;;  %v719_v33 = vadd.s32 3, %v299_v17  ;;  %vm308_vm0 = vcmp.eq.s32.totalorder %v303_v27, 2  ;;  %v393_v40 = vand.u32 2147483647, %v392_v37 }
  0x7f   :  { %v402_v21 = vsel %vm1515_vm11, 0, %v400_v46  ;;  %v534_v25 = vsub.s32 32, %v533_v49  ;;  %v1540_v42 = vadd.s32 %v1477_v45, %v1492_v63  ;;  %v536_v44 = vshll.u32 %v1232_v3, %v533_v49 }
  0x80   :  { %v1537_v41 = vand.u32 3, %v402_v21  ;;  %v479_v43 = vshll.u32 %v1533_v51, 30  ;;  %v396_v56 = vmul.f32 %v395_v38, %v393_v40  ;;  %v539_v59 = vshll.u32 %v1233_v5, %v533_v49 }
  0x81   :  { %v1544_v52 = vpop.eup %1161  ;;  %v537_v58 = vshrl.u32 %v1233_v5, %v534_v25  ;;  %v540_v0 = vshrl.u32 %v1234_v7, %v534_v25  ;;  %v1554_v45 = vshll.u32 %v527_v39, 8  ;;  %v1556_v63 = vand.u32 3, %v719_v33 }
  0x82   :  { %v1549_v17 = vpop.eup %1163  ;;  %v309_v55 = vxor.u32 2147483648, %v1544_v52  ;;  %v1552_v2 = vsub.s32 %v476_v32, %v479_v43  ;;  %v397_v61 = vxor.u32 2147483648, %v396_v56  ;;  %v1559_v31 = vshrl.u32 %v531_v23, 5 }
  0x83   :  { %v306_v8 = vxor.u32 2147483648, %v1549_v17  ;;  %v1561_v50 = vadd.s32 3, %v402_v21  ;;  %v538_v13 = vor.u32 %v537_v58, %v536_v44  ;;  %v542_v14 = vshll.u32 %v1234_v7, %v533_v49 }
  0x84   :  { %v310_v5 = vsel %vm308_vm0, %v309_v55, %v1549_v17  ;;  %v482_v62 = vsub.s32 0, %v1552_v2  ;;  %v398_v11 = vsel %vm315_vm8, %v397_v61, %v396_v56  ;;  %v541_v24 = vor.u32 %v540_v0, %v539_v59 }
  0x85   :  { %v307_v30 = vsel %vm305_vm15, %v1544_v52, %v306_v8  ;;  %v543_v35 = vshrl.u32 %v1235_v16, %v534_v25  ;;  %v401_v57 = vsel %vm1515_vm11, %v1276_v29, %v398_v11  ;;  %vm722_vm1 = vcmp.eq.s32.totalorder %v1556_v63, 0 }
  0x86   :  { %v311_v47 = vsel %vm304_vm14, %v307_v30, %v310_v5  ;;  %v1104_v60 = vmin.u32 %v482_v62, %v1552_v2  ;;  %1165 = vcosq.f32 %v401_v57  ;;  %v502_v26 = vsub.s32 4, %v1533_v51 }
  0x87   :  { %v312_v7 = vsel %vm302_vm13, nan, %v311_v47  ;;  %v535_v32 = vshrl.u32 %v1232_v3, %v534_v25  ;;  %vm725_vm2 = vcmp.eq.s32.totalorder %v1556_v63, 2  ;;  %1167 = vsinq.f32 %v401_v57 }
  0x88   :  { %v622_v27 = vmul.f32 %v312_v7, %v1511_v1  ;;  %v484_v20 = vclz %v1104_v60  ;;  %v544_v9 = vor.u32 %v543_v35, %v542_v14  ;;  %vm721_vm3 = vcmp.lt.s32.totalorder %v1556_v63, 2 }
  0x89   :  { %vm411_vm4 = vcmp.eq.s32.totalorder %v1537_v41, 2  ;;  %v545_v34 = vshll.u32 %v1235_v16, %v533_v49  ;;  %v546_v46 = vshrl.u32 %v1236_v19, %v534_v25  ;;  %v548_v18 = vshll.u32 %v1236_v19, %v533_v49 }
  0x8a   :  { %v549_v3 = vshrl.u32 %v1237_v22, %v534_v25  ;;  %v1048_v23 = vmul.f32 %v1390_v6, %v622_v27  ;;  %vm408_vm5 = vcmp.eq.s32.totalorder %v1537_v41, 0  ;;  %v1105_v37 = vadd.s32 4294967294, %v484_v20 }
  0x8b   :  { %vm551_vm6 = vcmp.lt.s32.totalorder %v1559_v31, 1  ;;  %vm552_vm7 = vcmp.lt.s32.totalorder %v1559_v31, 2  ;;  %vm407_vm8 = vcmp.lt.s32.totalorder %v1537_v41, 2  ;;  %v547_v38 = vor.u32 %v546_v46, %v545_v34 }
  0x8c   :  { %v550_v39 = vor.u32 %v549_v3, %v548_v18  ;;  %vm553_vm9 = vcmp.lt.s32.totalorder %v1559_v31, 3  ;;  %vm554_vm10 = vcmp.lt.s32.totalorder %v1559_v31, 4  ;;  %v1056_v16 = vadd.f32 %v1048_v23, %v25_v12  ;;  %v29_v18 = vld [vmem:[#allocation5 + $0x20] sm:$0xff] }
  0x8d   :  { %vm405_vm11 = vweird.f32 %v1276_v29  ;;  %vm1106_vm12 = vcmp.lt.s32.totalorder %v1105_v37, 0  ;;  %v555_v19 = vsel %vm551_vm6, %v535_v32, %v538_v13  ;;  %v556_v22 = vsel %vm554_vm10, %v544_v9, 2102212464 }
  0x8e   :  { %vm418_vm14 = vcmp.lt.s32.totalorder %v1288_v53, 0  ;;  %v487_v49 = vsel %vm1106_vm12, 0, %v1105_v37  ;;  %v557_v33 = vsel %vm553_vm9, %v541_v24, %v556_v22  ;;  %v559_v40 = vsel %vm551_vm6, %v538_v13, %v541_v24  ;;  %1064 = vst [vmem:[#allocation8] sm:$0xff] %v1056_v16 }
  0x8f   :  { %v560_v21 = vsel %vm554_vm10, %v547_v38, 920167782  ;;  %v488_v25 = vsub.s32 32, %v487_v49  ;;  %v489_v43 = vshll.u32 %v1552_v2, %v487_v49  ;;  %v492_v44 = vsub.s32 4294967266, %v487_v49 }
  0x90   :  { %v558_v56 = vsel %vm552_vm7, %v555_v19, %v557_v33  ;;  %v561_v58 = vsel %vm553_vm9, %v544_v9, %v560_v21  ;;  %v563_v59 = vsel %vm551_vm6, %v541_v24, %v544_v9  ;;  %v564_v0 = vsel %vm554_vm10, %v550_v39, 1326507024  ;;  %v1166_v14 = vpop.eup %1165 }
  0x91   :  { %v574_v61 = vmul.u32 %v1554_v45, %v558_v56  ;;  %v490_v5 = vshrl.u32 %v1540_v42, %v488_v25  ;;  %v493_v62 = vadd.s32 127, %v492_v44  ;;  %v562_v2 = vsel %vm552_vm7, %v559_v40, %v561_v58  ;;  %v1168_v35 = vpop.eup %1167 }
  0x92   :  { %v565_v13 = vsel %vm553_vm9, %v547_v38, %v564_v0  ;;  %v1631_v11 = vmul.u32.u64.low %v1554_v45, %v562_v2  ;;  %v1632_v24 = vmul.u32.u64.high %v1554_v45, %v562_v2, %v1631_v11  ;;  %v724_v42 = vsel %vm722_vm1, %v1544_v52, %v306_v8  ;;  %v26_v38 = vld [vmem:[#allocation5 + $0x8] sm:$0xff] }
  0x93   :  { %v566_v30 = vsel %vm552_vm7, %v563_v59, %v565_v13  ;;  %v412_v47 = vxor.u32 2147483648, %v1166_v14  ;;  %vm1641_vm15 = vcmp.le.f32.partialorder %v416_v48, 0.7853982  ;;  %v491_v31 = vor.u32 %v490_v5, %v489_v43  ;;  %v30_v0 = vld [vmem:[#allocation5 + $0x28] sm:$0xff] }
  0x94   :  { %v494_v60 = vshll.u32 %v493_v62, 23  ;;  %v727_v7 = vsel %vm725_vm2, %v309_v55, %v1549_v17  ;;  %v409_v32 = vxor.u32 2147483648, %v1168_v35  ;;  %v577_v17 = vadd.s32 1, %v1632_v24 }
  0x95   :  { %v1651_v27 = vmul.u32.u64.low %v1554_v45, %v566_v30  ;;  %v1652_v8 = vmul.u32.u64.high %v1554_v45, %v566_v30, %v1651_v27  ;;  %v728_v20 = vsel %vm721_vm3, %v724_v42, %v727_v7  ;;  %v413_v48 = vsel %vm411_vm4, %v412_v47, %v1168_v35 }
  0x96   :  { %v495_v9 = vor.u32 4788187, %v494_v60  ;;  %v498_v12 = vcvt.s32.f32 %v491_v31  ;;  %v729_v34 = vsel %vm302_vm13, nan, %v728_v20  ;;  %v410_v52 = vsel %vm408_vm5, %v1166_v14, %v409_v32 }
  0x97   :  { %v1042_v55 = vmul.f32 %v729_v34, %v1511_v1  ;;  %v824_v45 = vand.u32 3, %v1561_v50  ;;  %v414_v63 = vsel %vm407_vm8, %v410_v52, %v413_v48  ;;  %1169 = vrsqrt.f32 %v1521_v36 }
  0x98   :  { %v496_v46 = vand.u32 2147483647, %v495_v9  ;;  %v503_v28 = vsel %vm418_vm14, %v502_v26, %v1533_v51  ;;  %v415_v3 = vsel %vm405_vm11, nan, %v414_v63  ;;  %v1676_v1 = vadd.s32 %v1631_v11, %v1652_v8 }
  0x99   :  { %vm576_vm13 = vc.u32 %v1652_v8, %v1631_v11  ;;  %v1052_v41 = vmul.f32 %v1390_v6, %v1042_v55  ;;  %v623_v50 = vmul.f32 %v415_v3, %v1528_v54  ;;  %vm825_vm0 = vcmp.lt.s32.totalorder %v824_v45, 2 }
  0x9a   :  { %v499_v23 = vmul.f32 %v498_v12, %v496_v46  ;;  %v578_v37 = vsel %vm576_vm13, %v577_v17, %v1632_v24  ;;  %vm826_vm1 = vcmp.eq.s32.totalorder %v824_v45, 0  ;;  %vm829_vm2 = vcmp.eq.s32.totalorder %v824_v45, 2 }
  0x9b   :  { %v579_v39 = vadd.s32 %v578_v37, %v574_v61  ;;  %v1060_v51 = vadd.f32 %v1052_v41, %v29_v18  ;;  %v1049_v26 = vmul.f32 %v1390_v6, %v623_v50  ;;  %v828_v19 = vsel %vm826_vm1, %v1166_v14, %v409_v32  ;;  %v27_v41 = vld [vmem:[#allocation5 + $0x10] sm:$0xff] }
  0x9c   :  { %v500_v16 = vxor.u32 2147483648, %v499_v23  ;;  %v831_v22 = vsel %vm829_vm2, %v412_v47, %v1168_v35  ;;  %v149_v25 = vsub.f32 1.0, %v1401_v10  ;;  %v505_v56 = vsel %vm1641_vm15, 0, %v503_v28 }
  0x9d   :  { %v580_v49 = vadd.s32 536870912, %v579_v39  ;;  %1068 = vst [vmem:[#allocation8 + $0x20] sm:$0xff] %v1060_v51  ;;  %v832_v33 = vsel %vm825_vm0, %v828_v19, %v831_v22  ;;  %v1057_v40 = vadd.f32 %v1049_v26, %v26_v38  ;;  %v927_v5 = vadd.s32 3, %v505_v56 }
  0x9e   :  { %v501_v21 = vsel %vm418_vm14, %v500_v16, %v499_v23  ;;  %v833_v43 = vsel %vm405_vm11, nan, %v832_v33  ;;  %v509_v30 = vand.u32 3, %v505_v56  ;;  %vm194_vm3 = vcmp.eq.f32.partialorder %v1521_v36, inf }
  0x9f   :  { %v504_v44 = vsel %vm1641_vm15, %v1288_v53, %v501_v21  ;;  %v1693_v58 = vshrl.u32 %v580_v49, 30  ;;  %v1043_v59 = vmul.f32 %v833_v43, %v1528_v54  ;;  %1065 = vst [vmem:[#allocation8 + $0x8] sm:$0xff] %v1057_v40  ;;  %v928_v11 = vand.u32 3, %v927_v5 }
  0xa0   :  { %1171 = vcosq.f32 %v504_v44  ;;  %vm196_vm4 = vcmp.eq.f32.partialorder %v1521_v36, 0.0  ;;  %v197_v47 = vand.u32 2147483648, %v1521_v36  ;;  %vm514_vm5 = vcmp.eq.s32.totalorder %v509_v30, 2 }
  0xa1   :  { %1173 = vsinq.f32 %v504_v44  ;;  %v582_v10 = vshll.u32 %v1693_v58, 30  ;;  %v1053_v29 = vmul.f32 %v1390_v6, %v1043_v59  ;;  %v1170_v61 = vpop.eup %1169  ;;  %vm933_vm6 = vcmp.eq.s32.totalorder %v928_v11, 2 }
  0xa2   :  { %1175 = vlog2.f32 %v149_v25  ;;  %v193_v14 = vmul.f32 %v1170_v61, %v1521_v36  ;;  %vm511_vm7 = vcmp.eq.s32.totalorder %v509_v30, 0  ;;  %vm930_vm8 = vcmp.eq.s32.totalorder %v928_v11, 0 }
  0xa3   :  { %v583_v62 = vsub.s32 %v579_v39, %v582_v10  ;;  %v1061_v2 = vadd.f32 %v1053_v29, %v30_v0  ;;  %vm508_vm9 = vweird.f32 %v1288_v53  ;;  %vm510_vm10 = vcmp.lt.s32.totalorder %v509_v30, 2  ;;  %v31_v39 = vld [vmem:[#allocation5 + $0x30] sm:$0xff] }
  0xa4   :  { %v195_v35 = vsel %vm194_vm3, %v1521_v36, %v193_v14  ;;  %vm929_vm12 = vcmp.lt.s32.totalorder %v928_v11, 2  ;;  %v605_v33 = vsub.s32 4, %v1693_v58  ;;  %vm521_vm14 = vcmp.lt.s32.totalorder %v1385_v4, 0 }
  0xa5   :  { %v585_v13 = vsub.s32 0, %v583_v62  ;;  %1069 = vst [vmem:[#allocation8 + $0x28] sm:$0xff] %v1061_v2  ;;  %v198_v20 = vsel %vm196_vm4, %v197_v47, %v195_v35  ;;  %vm520_vm15 = vcmp.le.f32.partialorder %v519_v15, 0.7853982 }
  0xa6   :  { %v606_v21 = vsel %vm521_vm14, %v605_v33, %v1693_v58 }
  0xa7   :  { %v1108_v54 = vmin.u32 %v585_v13, %v583_v62  ;;  %v608_v44 = vsel %vm520_vm15, 0, %v606_v21 }
  0xa8   :  { %v1031_v56 = vadd.s32 3, %v608_v44  ;;  %v612_v0 = vand.u32 3, %v608_v44 }
  0xa9   :  { %v587_v24 = vclz %v1108_v54 }
  0xaa   :  { %v1172_v42 = vpop.eup %1171  ;;  %v1032_v10 = vand.u32 3, %v1031_v56  ;;  %vm617_vm1 = vcmp.eq.s32.totalorder %v612_v0, 2  ;;  %vm614_vm3 = vcmp.eq.s32.totalorder %v612_v0, 0 }
  0xab   :  { %v1174_v57 = vpop.eup %1173  ;;  %v515_v31 = vxor.u32 2147483648, %v1172_v42  ;;  %v1109_v60 = vadd.s32 4294967294, %v587_v24 }
  0xac   :  { %v512_v7 = vxor.u32 2147483648, %v1174_v57  ;;  %v1176_v32 = vpop.eup %1175  ;;  %vm1037_vm2 = vcmp.eq.s32.totalorder %v1032_v10, 2  ;;  %vm1034_vm4 = vcmp.eq.s32.totalorder %v1032_v10, 0 }
  0xad   :  { %v516_v27 = vsel %vm514_vm5, %v515_v31, %v1174_v57  ;;  %vm1110_vm11 = vcmp.lt.s32.totalorder %v1109_v60, 0  ;;  %v935_v8 = vsel %vm933_vm6, %v515_v31, %v1174_v57  ;;  %v173_v63 = vmul.f32 0.6931472, %v1176_v32 }
  0xae   :  { %v513_v48 = vsel %vm511_vm7, %v1172_v42, %v512_v7  ;;  %v590_v9 = vsel %vm1110_vm11, 0, %v1109_v60  ;;  %v932_v12 = vsel %vm930_vm8, %v1172_v42, %v512_v7  ;;  %vm613_vm5 = vcmp.lt.s32.totalorder %v612_v0, 2  ;;  %v28_v60 = vld [vmem:[#allocation5 + $0x18] sm:$0xff] }
  0xaf   :  { %v517_v34 = vsel %vm510_vm10, %v513_v48, %v516_v27  ;;  %v591_v52 = vsub.s32 32, %v590_v9  ;;  %v592_v17 = vshll.u32 %v583_v62, %v590_v9  ;;  %v595_v55 = vsub.s32 4294967266, %v590_v9  ;;  %v32_v7 = vld [vmem:[#allocation5 + $0x38] sm:$0xff] }
  0xb0   :  { %v518_v45 = vsel %vm508_vm9, nan, %v517_v34  ;;  %v936_v46 = vsel %vm929_vm12, %v932_v12, %v935_v8  ;;  %v177_v16 = vmul.f32 -2.0, %v173_v63  ;;  %vm1033_vm6 = vcmp.lt.s32.totalorder %v1032_v10, 2 }
  0xb1   :  { %v624_v28 = vmul.f32 %v518_v45, %v198_v20  ;;  %v593_v18 = vshrl.u32 %v1676_v1, %v591_v52  ;;  %v596_v3 = vadd.s32 127, %v595_v55  ;;  %v937_v36 = vsel %vm508_vm9, nan, %v936_v46 }
  0xb2   :  { %v1044_v50 = vmul.f32 %v937_v36, %v198_v20  ;;  %1177 = vrsqrt.f32 %v177_v16  ;;  %vm201_vm13 = vcmp.eq.f32.partialorder %v177_v16, inf  ;;  %vm203_vm0 = vcmp.eq.f32.partialorder %v177_v16, 0.0 }
  0xb3   :  { %v1050_v23 = vmul.f32 %v1390_v6, %v624_v28  ;;  %v594_v37 = vor.u32 %v593_v18, %v592_v17  ;;  %v597_v38 = vshll.u32 %v596_v3, 23  ;;  %v204_v5 = vand.u32 2147483648, %v177_v16 }
  0xb4   :  { %v1054_v51 = vmul.f32 %v1390_v6, %v1044_v50  ;;  %vm611_vm7 = vweird.f32 %v1385_v4 }
  0xb5   :  { %v1058_v26 = vadd.f32 %v1050_v23, %v27_v41  ;;  %v598_v19 = vor.u32 4788187, %v597_v38  ;;  %v601_v22 = vcvt.s32.f32 %v594_v37 }
  0xb6   :  { %v1062_v49 = vadd.f32 %v1054_v51, %v31_v39 }
  0xb7   :  { %1066 = vst [vmem:[#allocation8 + $0x10] sm:$0xff] %v1058_v26  ;;  %v599_v1 = vand.u32 2147483647, %v598_v19 }
  0xb8   :  { %1070 = vst [vmem:[#allocation8 + $0x30] sm:$0xff] %v1062_v49 }
  0xb9   :  { %v602_v53 = vmul.f32 %v601_v22, %v599_v1 }
  0xbb   :  { %v603_v40 = vxor.u32 2147483648, %v602_v53 }
  0xbc   :  { %v1178_v59 = vpop.eup %1177 }
  0xbd   :  { %v604_v25 = vsel %vm521_vm14, %v603_v40, %v602_v53  ;;  %v200_v29 = vmul.f32 %v1178_v59, %v177_v16 }
  0xbe   :  { %v607_v43 = vsel %vm520_vm15, %v1385_v4, %v604_v25 }
  0xbf   :  { %1179 = vcosq.f32 %v607_v43  ;;  %v202_v62 = vsel %vm201_vm13, %v177_v16, %v200_v29 }
  0xc0   :  { %1181 = vsinq.f32 %v607_v43  ;;  %v205_v30 = vsel %vm203_vm0, %v204_v5, %v202_v62 }
  0xc9   :  { %v1180_v61 = vpop.eup %1179 }
  0xca   :  { %v1182_v15 = vpop.eup %1181  ;;  %v618_v58 = vxor.u32 2147483648, %v1180_v61 }
  0xcb   :  { %v615_v2 = vxor.u32 2147483648, %v1182_v15 }
  0xcc   :  { %v619_v13 = vsel %vm617_vm1, %v618_v58, %v1182_v15  ;;  %v1039_v14 = vsel %vm1037_vm2, %v618_v58, %v1182_v15 }
  0xcd   :  { %v616_v11 = vsel %vm614_vm3, %v1180_v61, %v615_v2  ;;  %v1036_v54 = vsel %vm1034_vm4, %v1180_v61, %v615_v2 }
  0xce   :  { %v620_v24 = vsel %vm613_vm5, %v616_v11, %v619_v13  ;;  %v1040_v42 = vsel %vm1033_vm6, %v1036_v54, %v1039_v14 }
  0xcf   :  { %v621_v35 = vsel %vm611_vm7, nan, %v620_v24  ;;  %v1041_v47 = vsel %vm611_vm7, nan, %v1040_v42 }
  0xd0   :  { %v625_v57 = vmul.f32 %v621_v35, %v205_v30  ;;  %v1045_v31 = vmul.f32 %v1041_v47, %v205_v30 }
  0xd2   :  { %v1051_v32 = vmul.f32 %v1390_v6, %v625_v57  ;;  %v1055_v27 = vmul.f32 %v1390_v6, %v1045_v31 }
  0xd4   :  { %v1059_v4 = vadd.f32 %v1051_v32, %v28_v60  ;;  %v1063_v8 = vadd.f32 %v1055_v27, %v32_v7 }
  0xd6   :  { %1067 = vst [vmem:[#allocation8 + $0x18] sm:$0xff] %v1059_v4  ;;  %1071 = vst [vmem:[#allocation8 + $0x38] sm:$0xff] %v1063_v8 }
  0xd7   :  { %1216 = shalt.err (!%p1213_p12)
}
  0xd8   :  { %s1217_s4 = scalar_lea.hbm %s1737_s3, 1024 }
  0xd9   :  { %p1218_p13 = scmp.ne.s32.totalorder %s1737_s3, %s1217_s4  ;;  %p1221_p0 = scmp.lt.u32.totalorder %s1217_s4, %s1737_s3 }
  0xdb   :  { %p1223_p1 = pnand %p1221_p0, %p1218_p13 }
  0xdd   :  { %1226 = shalt.err (!%p1223_p1)
}
  0xde   :  { %1081 = dma.vmem_to_hbm [thread:$0]  %s1079_s27, 1024, %s1737_s3, [#allocation7]  }
  0xdf   :  { %1229 = dma.done.wait [#allocation7], 1024  }
  0xe0   :  { %1230 = vsyncadd [#allocation7], 4294966272 }
  0xe1   :  { %1085 = vsyncpa [#allocation6], 1 }
  0xe2   :  { %1086 = vsyncpa [#allocation7], 1 }

</bundles_post_ra>
